<compile_context>
chip_gen: v7x
topology: tpu7x:2x2x1
jax: 0.10.0
libtpu: 0.0.40
codegen_flags: <defaults>
</compile_context>

<pallas_src>
import functools

import jax
import jax.numpy as jnp
from jax.experimental import pallas as pl
from jax.experimental.pallas import tpu as pltpu


def _round_up(v, m):
    return ((v + m - 1) // m) * m


def _cdiv(a, b):
    return -(-a // b)


def _vmem_capacity_bytes():
    try:
        return int(pltpu.get_tpu_info().vmem_capacity_bytes)
    except Exception:
        return 64 * 1024 * 1024  # conservative default (v7x-sized)


# ----------------------------------------------------------------------------
# Kernels
# ----------------------------------------------------------------------------
def _proj_resident_kernel(x_ref, w_ref, o_ref, *, normalize):
    """One (tm, d_in) x (d_in, d_out) tile of y = [l2_normalize](x @ w).

    Grid = (num_m,).  W has a constant block index -> fetched once, resident.
    """
    y = jnp.dot(x_ref[...], w_ref[...], preferred_element_type=jnp.float32)
    if normalize:
        y = y * jax.lax.rsqrt(jnp.sum(y * y, axis=-1, keepdims=True))
    o_ref[...] = y.astype(o_ref.dtype)


def _proj_streamk_kernel(x_ref, w_ref, o_ref, acc_ref, *, normalize):
    """K-streaming fallback: grid = (num_m, num_k), K last ("arbitrary").

    acc_ref is a (tm, d_out) f32 VMEM scratch.  First K step assigns the
    partial product directly (no zero-fill pass); last K step normalizes.
    """
    k = pl.program_id(1)
    part = jnp.dot(x_ref[...], w_ref[...], preferred_element_type=jnp.float32)

    @pl.when(k == 0)
    def _():
        acc_ref[...] = part

    @pl.when(k > 0)
    def _():
        acc_ref[...] += part

    @pl.when(k == pl.num_programs(1) - 1)
    def _():
        y = acc_ref[...]
        if normalize:
            y = y * jax.lax.rsqrt(jnp.sum(y * y, axis=-1, keepdims=True))
        o_ref[...] = y.astype(o_ref.dtype)


def _norm_only_kernel(x_ref, o_ref):
    """y = x / ||x||_2 along the last dim (one batch tile per grid step)."""
    x = x_ref[...].astype(jnp.float32)
    o_ref[...] = (x * jax.lax.rsqrt(jnp.sum(x * x, axis=-1, keepdims=True))
                  ).astype(o_ref.dtype)


# ----------------------------------------------------------------------------
# Wrapper
# ----------------------------------------------------------------------------
class ProjectionLayerPallas:
    """Pallas port of cxrvlms ProjectionLayer wrapping a bias-free Linear."""

    _TINY = 128 * 128  # below this (rows * max-dim) a custom kernel is pure overhead

    def __init__(self, weight=None, projection=True, norm=True,
                 block_m=None, block_k=None, compute_dtype=None,
                 force_stream=False):
        # weight: (out_features, in_features), like nn.Linear.weight (bias-free).
        self.apply_projection = projection
        self.norm_modality = (not projection) and norm
        self.norm_projection = norm
        self.last_features = None
        self.block_m = block_m
        self.compute_dtype = compute_dtype

        # Generation-aware VMEM budget (v5e/v6e: 128 MiB, v7x: 64 MiB).
        self._vmem_cap = _vmem_capacity_bytes()
        self._vmem_limit = min(int(self._vmem_cap * 3 // 4), 96 * 1024 * 1024)
        self._budget = int(self._vmem_limit * 0.8)
        small_vmem = self._vmem_cap <= 64 * 1024 * 1024       # v7x
        self._max_tk = 512 if small_vmem else 1024
        self._norm_tm_cap = 512 if small_vmem else 1024

        self.weight = weight
        self._w_prepared = None
        self._resident = False
        if projection:
            assert weight is not None, "projection=True requires a weight"
            w = jnp.asarray(weight)
            if compute_dtype is not None:
                w = w.astype(compute_dtype)
            d_out, d_in = w.shape
            self.d_in, self.d_out = d_in, d_out
            w_bytes = d_in * d_out * w.dtype.itemsize

            # Resident-W fast path when the (conservatively double-buffered)
            # weight leaves at least half the budget for x/out blocks.
            self._resident = (not force_stream) and (2 * w_bytes <= self._budget // 2)

            if self._resident:
                # One-time transpose to (d_in, d_out); no padding needed
                # (full-extent block dims are exempt from the (8,128) rule).
                self._w_prepared = w.T
                self.block_k = None
            else:
                # Balanced K split keeps zero-padding under one 128-col group
                # (vs. the old round-up-to-block_k which could nearly double K).
                max_tk = block_k if block_k is not None else self._max_tk
                max_tk = max(128, _round_up(max_tk, 128))
                d_in_128 = _round_up(d_in, 128)
                num_k = _cdiv(d_in_128, max_tk)
                tk = _round_up(_cdiv(d_in_128, num_k), 128)
                self.block_k = tk
                self.num_k = num_k
                self.d_in_pad = num_k * tk
                w_t = w.T                                  # (d_in, d_out)
                if self.d_in_pad != d_in:
                    w_t = jnp.pad(w_t, ((0, self.d_in_pad - d_in), (0, 0)))
                self._w_prepared = w_t

    # -------------------------------- helpers --------------------------------
    def _jnp_fallback(self, x2):
        y = x2
        if self.norm_modality:
            yf = y.astype(jnp.float32)
            y = (yf * jax.lax.rsqrt(jnp.sum(yf * yf, -1, keepdims=True))
                 ).astype(x2.dtype)
        if self.apply_projection:
            yf = jnp.dot(y, jnp.asarray(self.weight).T,
                         preferred_element_type=jnp.float32)
            if self.norm_projection:
                yf = yf * jax.lax.rsqrt(jnp.sum(yf * yf, -1, keepdims=True))
            y = yf.astype(x2.dtype)
        return y

    def _pick_tm(self, b, row_bytes, resident_bytes=0, mem_bound=False):
        """128-multiple batch tile; aims for num_m >= 2 (feeds both v7x TCs)."""
        if self.block_m is not None:
            tm = _round_up(self.block_m, 8)
        else:
            cap = self._norm_tm_cap if mem_bound else 512
            target_tiles = max(2, _cdiv(b, cap))
            tm = _round_up(_cdiv(b, target_tiles), 128)
            tm = min(tm, _round_up(b, 128))
        # VMEM guard: double-buffered per-row blocks beside any resident bytes.
        avail = max(self._budget - resident_bytes, 0)
        if row_bytes > 0:
            cap_rows = avail // row_bytes
            cap_rows = max(8, (cap_rows // 8) * 8)
            tm = max(8, min(tm, cap_rows))
        return tm

    # -------------------------------- paths ----------------------------------
    def _norm_only(self, x2, b, d_in):
        itemsize = x2.dtype.itemsize
        tm = self._pick_tm(b, row_bytes=4 * d_in * itemsize, mem_bound=True)
        num_m = _cdiv(b, tm)
        return pl.pallas_call(
            _norm_only_kernel,
            out_shape=jax.ShapeDtypeStruct((b, d_in), x2.dtype),
            grid_spec=pltpu.PrefetchScalarGridSpec(
                num_scalar_prefetch=0,
                grid=(num_m,),
                in_specs=[pl.BlockSpec((tm, d_in), lambda i: (i, 0))],
                out_specs=pl.BlockSpec((tm, d_in), lambda i: (i, 0)),
            ),
            compiler_params=pltpu.CompilerParams(
                dimension_semantics=("parallel",),
                vmem_limit_bytes=self._vmem_limit),
        )(x2)

    def _proj_resident(self, x2, b, out_dtype):
        d_in, d_out = self.d_in, self.d_out
        w = self._w_prepared
        xb = x2.dtype.itemsize
        ob = jnp.dtype(out_dtype).itemsize
        w_resident = 2 * d_in * d_out * w.dtype.itemsize      # conservative
        row_bytes = 2 * (d_in * xb + d_out * ob)
        tm = self._pick_tm(b, row_bytes=row_bytes, resident_bytes=w_resident)
        num_m = _cdiv(b, tm)
        kernel = functools.partial(_proj_resident_kernel,
                                   normalize=self.norm_projection)
        return pl.pallas_call(
            kernel,
            out_shape=jax.ShapeDtypeStruct((b, d_out), out_dtype),
            grid_spec=pltpu.PrefetchScalarGridSpec(
                num_scalar_prefetch=0,
                grid=(num_m,),
                in_specs=[
                    pl.BlockSpec((tm, d_in), lambda i: (i, 0)),
                    # Constant block index -> W DMA'd once, stays resident.
                    pl.BlockSpec((d_in, d_out), lambda i: (0, 0)),
                ],
                out_specs=pl.BlockSpec((tm, d_out), lambda i: (i, 0)),
            ),
            compiler_params=pltpu.CompilerParams(
                dimension_semantics=("parallel",),
                vmem_limit_bytes=self._vmem_limit),
        )(x2, w)

    def _proj_streamk(self, x2, b, out_dtype):
        # TODO(synk): add an N (d_out) grid axis + post-pass normalization for
        # projections so wide that even a single (tk, d_out) W block overflows VMEM.
        d_in, d_out = self.d_in, self.d_out
        d_in_pad, tk, num_k = self.d_in_pad, self.block_k, self.num_k
        if d_in_pad != d_in:
            # Zero K-padding only (required so padded columns don't pollute
            # the accumulation); batch is NOT padded.
            x2 = jnp.pad(x2, ((0, 0), (0, d_in_pad - d_in)))
        xb = x2.dtype.itemsize
        ob = jnp.dtype(out_dtype).itemsize
        w_blocks = 2 * tk * d_out * self._w_prepared.dtype.itemsize
        row_bytes = 2 * (tk * xb + d_out * ob) + d_out * 4    # x/out 2x-buf + f32 acc
        tm = self._pick_tm(b, row_bytes=row_bytes, resident_bytes=w_blocks)
        num_m = _cdiv(b, tm)
        kernel = functools.partial(_proj_streamk_kernel,
                                   normalize=self.norm_projection)
        return pl.pallas_call(
            kernel,
            out_shape=jax.ShapeDtypeStruct((b, d_out), out_dtype),
            grid_spec=pltpu.PrefetchScalarGridSpec(
                num_scalar_prefetch=0,
                grid=(num_m, num_k),
                in_specs=[
                    pl.BlockSpec((tm, tk), lambda i, k: (i, k)),
                    pl.BlockSpec((tk, d_out), lambda i, k: (k, 0)),
                ],
                out_specs=pl.BlockSpec((tm, d_out), lambda i, k: (i, 0)),
                scratch_shapes=[pltpu.VMEM((tm, d_out), jnp.float32)],
            ),
            compiler_params=pltpu.CompilerParams(
                dimension_semantics=("parallel", "arbitrary"),
                vmem_limit_bytes=self._vmem_limit),
        )(x2, self._w_prepared)

    # -------------------------------- forward --------------------------------
    def __call__(self, x):
        self.last_features = x
        x = jnp.asarray(x)
        lead = x.shape[:-1]
        d_in = x.shape[-1]

        if not self.apply_projection and not self.norm_modality:
            return x

        x2 = x.reshape(-1, d_in)
        b = x2.shape[0]

        # Tiny shapes: a custom kernel is pure launch overhead.
        widest = self.d_out if self.apply_projection else d_in
        if b * max(d_in, widest) < self._TINY:
            out2 = self._jnp_fallback(x2)
            return out2.reshape(*lead, out2.shape[-1])

        if not self.apply_projection:
            return self._norm_only(x2, b, d_in).reshape(*lead, d_in)

        assert d_in == self.d_in, "input feature dim mismatch with weight"
        out_dtype = x.dtype
        if self.compute_dtype is not None:
            x2 = x2.astype(self.compute_dtype)

        if self._resident:
            out2 = self._proj_resident(x2, b, out_dtype)
        else:
            out2 = self._proj_streamk(x2, b, out_dtype)
        return out2.reshape(*lead, self.d_out)


# ----------------------------------------------------------------------------
# Reference + test harness
# ----------------------------------------------------------------------------
def _reference(x, weight, projection=True, norm=True):
    x = jnp.asarray(x, jnp.float32)
    if (not projection) and norm:
        x = x / jnp.linalg.norm(x, axis=-1, keepdims=True)
    if projection:
        x = x @ jnp.asarray(weight, jnp.float32).T
        if norm:
            x = x / jnp.linalg.norm(x, axis=-1, keepdims=True)
    return x


if __name__ == "__main__":
    key = jax.random.PRNGKey(0)
    k_x, k_w, k_x3, k_xs, k_ws, k_xt, k_wt = jax.random.split(key, 7)

    # Unaligned batch / non-128 d_out: exercises ragged M blocks + masked edges.
    batch, d_in, d_out = 200, 384, 192
    x = jax.random.normal(k_x, (batch, d_in), dtype=jnp.float32)
    weight = jax.random.normal(k_w, (d_out, d_in), dtype=jnp.float32) * 0.02
    ref = _reference(x, weight, projection=True, norm=True)

    # 1) Resident-weight path, projection + norm.
    layer = ProjectionLayerPallas(weight, projection=True, norm=True)
    out = layer(x)
    jax.block_until_ready(out)
    assert out.shape == (batch, d_out)
    assert jnp.allclose(out, ref, atol=1e-4, rtol=1e-4), "mismatch (resident proj+norm)"

    # 2) Projection only (norm=False) with 3-D leading dims.
    x3 = jax.random.normal(k_x3, (4, 64, d_in), dtype=jnp.float32)
    layer_p = ProjectionLayerPallas(weight, projection=True, norm=False)
    out_p = layer_p(x3)
    jax.block_until_ready(out_p)
    ref_p = _reference(x3, weight, projection=True, norm=False)
    assert out_p.shape == (4, 64, d_out)
    assert jnp.allclose(out_p, ref_p, atol=1e-4, rtol=1e-4), "mismatch (proj only, 3D)"

    # 3) Forced K-streaming path with unaligned d_in (exercises K zero-pad,
    #    k==0 direct assign, accumulate, last-k normalize).
    d_in_s, d_out_s = 320, 160
    xs = jax.random.normal(k_xs, (batch, d_in_s), dtype=jnp.float32)
    ws = jax.random.normal(k_ws, (d_out_s, d_in_s), dtype=jnp.float32) * 0.02
    layer_s = ProjectionLayerPallas(ws, projection=True, norm=True,
                                    force_stream=True, block_k=128)
    out_s = layer_s(xs)
    jax.block_until_ready(out_s)
    ref_s = _reference(xs, ws, projection=True, norm=True)
    assert jnp.allclose(out_s, ref_s, atol=1e-4, rtol=1e-4), "mismatch (stream-K)"

    # 4) Norm-only path (projection=False, norm=True).
    layer_nm = ProjectionLayerPallas(None, projection=False, norm=True)
    out_nm = layer_nm(x)
    jax.block_until_ready(out_nm)
    ref_nm = _reference(x, None, projection=False, norm=True)
    assert jnp.allclose(out_nm, ref_nm, atol=1e-5, rtol=1e-5), "mismatch (norm-only)"

    # 5) Opt-in bf16 compute (f32 accumulation, f32 output) — loose tolerance.
    layer_bf = ProjectionLayerPallas(weight, projection=True, norm=True,
                                     compute_dtype=jnp.bfloat16)
    out_bf = layer_bf(x)
    jax.block_until_ready(out_bf)
    assert out_bf.dtype == x.dtype
    assert jnp.allclose(out_bf, ref, atol=2e-2, rtol=2e-2), "mismatch (bf16 compute)"

    # 6) Tiny shapes: jnp fallback path.
    bt, dit, dot_ = 4, 32, 16
    x_t = jax.random.normal(k_xt, (bt, dit), dtype=jnp.float32)
    w_t = jax.random.normal(k_wt, (dot_, dit), dtype=jnp.float32) * 0.02
    layer_t = ProjectionLayerPallas(w_t, projection=True, norm=True)
    out_t = layer_t(x_t)
    jax.block_until_ready(out_t)
    ref_t = _reference(x_t, w_t, projection=True, norm=True)
    assert jnp.allclose(out_t, ref_t, atol=1e-5, rtol=1e-5), "mismatch (tiny fallback)"

    print("KERNEL_OK")
</pallas_src>

<mosaic_0001>
module attributes {stable_mosaic.version = 11 : i64} {
  func.func @_proj_resident_kernel(%arg0: i32, %arg1: memref<128x384xf32, #tpu.memory_space<vmem>>, %arg2: memref<384x192xf32, #tpu.memory_space<vmem>>, %arg3: memref<128x192xf32, #tpu.memory_space<vmem>>) attributes {dimension_semantics = [#tpu.dimension_semantics<parallel>], iteration_bounds = array<i64: 2>, scalar_prefetch = 0 : i64, scratch_operands = 0 : i64, tpu.core_type = #tpu.core_type<tc>, window_params = [{transform_indices = @transform_0, window_bounds = array<i64: 128, 384>}, {pipeline_mode = #tpu.pipeline_mode<synchronous>, transform_indices = @transform_1, window_bounds = array<i64: 384, 192>}, {transform_indices = @transform_2, window_bounds = array<i64: 128, 192>}]} {
    %c0 = arith.constant 0 : index
    %c0_0 = arith.constant 0 : index
    %0 = vector.load %arg1[%c0, %c0_0] : memref<128x384xf32, #tpu.memory_space<vmem>>, vector<128x384xf32>
    %c0_1 = arith.constant 0 : index
    %c0_2 = arith.constant 0 : index
    %1 = vector.load %arg2[%c0_1, %c0_2] : memref<384x192xf32, #tpu.memory_space<vmem>>, vector<384x192xf32>
    %cst = arith.constant dense<0.000000e+00> : vector<128x192xf32>
    %2 = tpu.matmul %0, %1, %cst {dimension_numbers = #tpu.dot_dimension_numbers<[1], [0], [0], [1], [0, 0, 1, 1], [], []>} : vector<128x384xf32>, vector<384x192xf32>, vector<128x192xf32> -> vector<128x192xf32>
    %3 = arith.mulf %2, %2 : vector<128x192xf32>
    %cst_3 = arith.constant dense<0.000000e+00> : vector<128xf32>
    %4 = vector.multi_reduction <add>, %3, %cst_3 [1] : vector<128x192xf32> to vector<128xf32>
    %5 = vector.shape_cast %4 : vector<128xf32> to vector<128x1xf32>
    %6 = math.rsqrt %5 : vector<128x1xf32>
    %7 = vector.broadcast %6 : vector<128x1xf32> to vector<128x192xf32>
    %8 = arith.mulf %2, %7 : vector<128x192xf32>
    %c0_4 = arith.constant 0 : index
    %c0_5 = arith.constant 0 : index
    %9 = vector.load %arg3[%c0_4, %c0_5] : memref<128x192xf32, #tpu.memory_space<vmem>>, vector<128x192xf32>
    tpu.vector_store %arg3[%c0_4, %c0_5], %8 {strides = array<i32>} : memref<128x192xf32, #tpu.memory_space<vmem>>, vector<128x192xf32>,
    return
  }
  func.func @transform_0(%arg0: i32) -> (i32, i32) {
    %c0_i32 = arith.constant 0 : i32
    %c0_i32_0 = arith.constant 0 : i32
    return %arg0, %c0_i32 : i32, i32
  }
  func.func @transform_1(%arg0: i32) -> (i32, i32) {
    %c0_i32 = arith.constant 0 : i32
    %c0_i32_0 = arith.constant 0 : i32
    %c0_i32_1 = arith.constant 0 : i32
    return %c0_i32, %c0_i32_0 : i32, i32
  }
  func.func @transform_2(%arg0: i32) -> (i32, i32) {
    %c0_i32 = arith.constant 0 : i32
    %c0_i32_0 = arith.constant 0 : i32
    return %arg0, %c0_i32 : i32, i32
  }
}

</mosaic_0001>

<bundles_post_ra>
// kernel: tpu_custom_call.1
= control target key start
LH: loop header
LB: loop body
LE: loop exit
PB: predicated region body
PF: predicated region fallthrough
CT: control target
= control target key end

     0   :  { %s1422_s9 = smov 0   ;;  %s1424_s10 = smov 0   ;;  %s2188_s0 = inlined_call_operand.vmem [shape: f32[200,384], index: 0, kind: input, shape index: {}]   ;;  %s2189_s1 = inlined_call_operand.vmem [shape: f32[384,192], index: 1, kind: input, shape index: {}]   ;;  %s2190_s2 = inlined_call_operand.vmem [shape: f32[200,192], index: 2, kind: output, shape index: {}]  }
   0x1   :  { %s1426_s11 = smov 0  }
   0x2 LB: > { %s1435_s12 = sadd.s32 4294967295, %s1372_s11   ;;  %s1437_s13 = sadd.s32 1, %s1372_s11   ;;  %s1372_s11 = sphi %s1426_s11, %s2199_s11   ;;  %s1368_s10 = sphi %s1424_s10, %s2198_s10   ;;  %s1364_s9 = sphi %s1422_s9, %s2197_s9  }
   0x3   : > { %s63_s14 = ssub.s32 %s1372_s11, %s1437_s13  ;;  %s66_s15 = sadd.s32 1, %s1368_s10 }
   0x4   : > { %p64_p0 = scmp.eq.s32.totalorder %s63_s14, 0  ;;  %p76_p1 = scmp.ne.s32.totalorder %s1368_s10, %s1364_s9 }
   0x5   : > { %p77_p2 = scmp.eq.s32.totalorder %s1435_s12, 1  ;;  %p1040_p3 = scmp.ge.s32.totalorder %s1372_s11, 1 }
   0x6   : > { %s1445_s16 = scalar_select %p64_p0, %s1368_s10, %s66_s15  }
   0x7   : > { %p1447_p4 = por %p77_p2, %p76_p1  ;;  %p124_p5 = scmp.lt.s32.totalorder %s1372_s11, 3 }
   0x9   : > { %p125_p6 = pnand %p1040_p3, %p124_p5 }
   0xa   : > { %v223_v0 = vld [vmem:[%s2189_s1 + $0x8] sm:$0xff] (!%p125_p6)  ;;  %v225_v1 = vld [vmem:[%s2189_s1 + $0x18] sm:$0xff] (!%p125_p6)  ;;  %v222_v2 = vld [vmem:[%s2189_s1] sm:$0xff] (!%p125_p6)  ;;  %v1406_v7 = vmov (!%p125_p6), 0.0   ;;  %s1540_s4 = sshll.u32 (!%p125_p6), %s1435_s12, 4  ;;  %vm672_vm0 = vcmask (!%p125_p6), 523264  }
   0xb   : > { %128 = sbr.rel (%p125_p6) target bundleno = 569 (0x239), region = 28  ;;  %v1068_v3 = vpack.c.bf16 (!%p125_p6), %v225_v1, %v223_v0  ;;  %v224_v4 = vld [vmem:[%s2189_s1 + $0x10] sm:$0xff] (!%p125_p6)  ;;  %v227_v5 = vld [vmem:[%s2189_s1 + $0x28] sm:$0xff] (!%p125_p6)  ;;  %v229_v6 = vld [vmem:[%s2189_s1 + $0x38] sm:$0xff] (!%p125_p6)  ;;  %543 = vmatprep.mubr.f32.mxu0 (!%p125_p6), %v1406_v7  ;;  %p157_p7 = scmp.lt.s32.totalorder (!%p125_p6), %s1540_s4, 24 }
   0xc   : > { %v1070_v8 = vpack.c.bf16 (!%p125_p6), %v224_v4, %v222_v2  ;;  %v1072_v9 = vpack.c.bf16 (!%p125_p6), %v229_v6, %v227_v5  ;;  %v226_v10 = vld [vmem:[%s2189_s1 + $0x20] sm:$0xff] (!%p125_p6)  ;;  %v228_v11 = vld [vmem:[%s2189_s1 + $0x30] sm:$0xff] (!%p125_p6)  ;;  %v231_v12 = vld [vmem:[%s2189_s1 + $0x48] sm:$0xff] (!%p125_p6) }
   0xd   : > { %1069 = vmatprep.subr.bf16.mxu1 (!%p125_p6), %v1068_v3  ;;  %v233_v13 = vld [vmem:[%s2189_s1 + $0x58] sm:$0xff] (!%p125_p6)  ;;  %v1074_v14 = vpack.c.bf16 (!%p125_p6), %v228_v11, %v226_v10  ;;  %v230_v16 = vld [vmem:[%s2189_s1 + $0x40] sm:$0xff] (!%p125_p6)  ;;  %v232_v17 = vld [vmem:[%s2189_s1 + $0x50] sm:$0xff] (!%p125_p6) }
   0xe   : > { %1071 = vmatpush1.bf16.msra.mxu1 (!%p125_p6), %v1070_v8  ;;  %v1076_v15 = vpack.c.bf16 (!%p125_p6), %v233_v13, %v231_v12  ;;  %v235_v18 = vld [vmem:[%s2189_s1 + $0x68] sm:$0xff] (!%p125_p6)  ;;  %v237_v19 = vld [vmem:[%s2189_s1 + $0x78] sm:$0xff] (!%p125_p6)  ;;  %v1078_v20 = vpack.c.bf16 (!%p125_p6), %v232_v17, %v230_v16  ;;  %v234_v22 = vld [vmem:[%s2189_s1 + $0x60] sm:$0xff] (!%p125_p6) }
   0xf   : > { %1073 = vmatprep.subr.bf16.mxu1 (!%p125_p6), %v1072_v9  ;;  %v1080_v21 = vpack.c.bf16 (!%p125_p6), %v237_v19, %v235_v18  ;;  %v236_v23 = vld [vmem:[%s2189_s1 + $0x70] sm:$0xff] (!%p125_p6)  ;;  %v239_v24 = vld [vmem:[%s2189_s1 + $0x88] sm:$0xff] (!%p125_p6)  ;;  %v241_v25 = vld [vmem:[%s2189_s1 + $0x98] sm:$0xff] (!%p125_p6) }
  0x10   : > { %v287_v26 = vld [vmem:[%s2189_s1 + $0x208] sm:$0xff] (!%p125_p6)  ;;  %v289_v27 = vld [vmem:[%s2189_s1 + $0x218] sm:$0xff] (!%p125_p6)  ;;  %v1082_v28 = vpack.c.bf16 (!%p125_p6), %v236_v23, %v234_v22  ;;  %v238_v29 = vld [vmem:[%s2189_s1 + $0x80] sm:$0xff] (!%p125_p6)  ;;  %v1084_v33 = vpack.c.bf16 (!%p125_p6), %v241_v25, %v239_v24 }
  0x11   : > { %v1132_v30 = vpack.c.bf16 (!%p125_p6), %v289_v27, %v287_v26  ;;  %v286_v31 = vld [vmem:[%s2189_s1 + $0x200] sm:$0xff] (!%p125_p6)  ;;  %v288_v32 = vld [vmem:[%s2189_s1 + $0x210] sm:$0xff] (!%p125_p6)  ;;  %v291_v36 = vld [vmem:[%s2189_s1 + $0x228] sm:$0xff] (!%p125_p6) }
  0x12   : > { %1075 = vmatpush1.bf16.msra.mxu1 %v1074_v14  ;;  %v240_v34 = vld [vmem:[%s2189_s1 + $0x90] sm:$0xff]  ;;  %v1134_v35 = vpack.c.bf16 %v288_v32, %v286_v31  ;;  %v293_v37 = vld [vmem:[%s2189_s1 + $0x238] sm:$0xff]  ;;  %v243_v38 = vld [vmem:[%s2189_s1 + $0xa8] sm:$0xff]  ;;  %s1597_s24 = scalar_select %p157_p7, %s1540_s4, 24 }
  0x13   : > { %1077 = vmatprep.subr.bf16.mxu1 %v1076_v15  ;;  %v245_v39 = vld [vmem:[%s2189_s1 + $0xb8] sm:$0xff]  ;;  %1133 = vmatprep.subr.bf16.mxu0 %v1132_v30  ;;  %v1136_v40 = vpack.c.bf16 %v293_v37, %v291_v36  ;;  %v290_v41 = vld [vmem:[%s2189_s1 + $0x220] sm:$0xff]  ;;  %v292_v42 = vld [vmem:[%s2189_s1 + $0x230] sm:$0xff]  ;;  %v1086_v43 = vpack.c.bf16 %v240_v34, %v238_v29  ;;  %s1065_s29 = sshll.u32 (%p1447_p4), %s1435_s12, 8 }
  0x14   : > { %1135 = vmatpush1.bf16.msra.mxu0 %v1134_v35  ;;  %v242_v44 = vld [vmem:[%s2189_s1 + $0xa0] sm:$0xff]  ;;  %v1138_v45 = vpack.c.bf16 %v292_v42, %v290_v41  ;;  %v295_v46 = vld [vmem:[%s2189_s1 + $0x248] sm:$0xff]  ;;  %v297_v47 = vld [vmem:[%s2189_s1 + $0x258] sm:$0xff]  ;;  %v1088_v48 = vpack.c.bf16 %v245_v39, %v243_v38  ;;  %s1196_s20 = smul.u32 24, %s1597_s24  ;;  %s2052_s5 = scalar_lea.vmem (%p1447_p4), %s2190_s2, %s1065_s29  }
  0x15   : > { %1137 = vmatprep.subr.bf16.mxu0 %v1136_v40  ;;  %v244_v49 = vld [vmem:[%s2189_s1 + $0xb0] sm:$0xff]  ;;  %v1140_v50 = vpack.c.bf16 %v297_v47, %v295_v46  ;;  %v294_v51 = vld [vmem:[%s2189_s1 + $0x240] sm:$0xff]  ;;  %v247_v53 = vld [vmem:[%s2189_s1 + $0xc8] sm:$0xff] }
  0x16   : > { %1079 = vmatpush1.bf16.msra.mxu1 %v1078_v20  ;;  %v296_v52 = vld [vmem:[%s2189_s1 + $0x250] sm:$0xff]  ;;  %v249_v54 = vld [vmem:[%s2189_s1 + $0xd8] sm:$0xff]  ;;  %v299_v55 = vld [vmem:[%s2189_s1 + $0x268] sm:$0xff]  ;;  %v1090_v58 = vpack.c.bf16 %v244_v49, %v242_v44  ;;  %s1651_s18 = scalar_lea.vmem %s2188_s0, %s1196_s20 }
  0x17   : > { %1081 = vmatprep.subr.bf16.mxu1 %v1080_v21  ;;  %v1142_v56 = vpack.c.bf16 %v296_v52, %v294_v51  ;;  %v301_v57 = vld [vmem:[%s2189_s1 + $0x278] sm:$0xff]  ;;  %v246_v59 = vld [vmem:[%s2189_s1 + $0xc0] sm:$0xff]  ;;  %v300_v62 = vld [vmem:[%s2189_s1 + $0x270] sm:$0xff]  ;;  %v1092_v63 = vpack.c.bf16 %v249_v54, %v247_v53 }
  0x18   : > { %1139 = vmatpush1.bf16.msra.mxu0 %v1138_v45  ;;  %v1144_v60 = vpack.c.bf16 %v301_v57, %v299_v55  ;;  %v298_v61 = vld [vmem:[%s2189_s1 + $0x260] sm:$0xff]  ;;  %v248_v0 = vld [vmem:[%s2189_s1 + $0xd0] sm:$0xff]  ;;  %v303_v1 = vld [vmem:[%s2189_s1 + $0x288] sm:$0xff] }
  0x19   : > { %1141 = vmatprep.subr.bf16.mxu0 %v1140_v50  ;;  %v305_v2 = vld [vmem:[%s2189_s1 + $0x298] sm:$0xff]  ;;  %v251_v3 = vld [vmem:[%s2189_s1 + $0xe8] sm:$0xff]  ;;  %v1146_v5 = vpack.c.bf16 %v300_v62, %v298_v61  ;;  %v1094_v6 = vpack.c.bf16 %v248_v0, %v246_v59  ;;  %v250_v8 = vld [vmem:[%s2189_s1 + $0xe0] sm:$0xff] }
  0x1a   : > { %1083 = vmatpush1.bf16.msra.mxu1 %v1082_v28  ;;  %v253_v4 = vld [vmem:[%s2189_s1 + $0xf8] sm:$0xff]  ;;  %v1148_v9 = vpack.c.bf16 %v305_v2, %v303_v1  ;;  %v302_v10 = vld [vmem:[%s2189_s1 + $0x280] sm:$0xff]  ;;  %v304_v11 = vld [vmem:[%s2189_s1 + $0x290] sm:$0xff] }
  0x1b   : > { %1085 = vmatprep.subr.bf16.mxu1 %v1084_v33  ;;  %v1096_v12 = vpack.c.bf16 %v253_v4, %v251_v3  ;;  %v252_v13 = vld [vmem:[%s2189_s1 + $0xf0] sm:$0xff]  ;;  %v307_v14 = vld [vmem:[%s2189_s1 + $0x2a8] sm:$0xff]  ;;  %v309_v15 = vld [vmem:[%s2189_s1 + $0x2b8] sm:$0xff]  ;;  %v1150_v18 = vpack.c.bf16 %v304_v11, %v302_v10 }
  0x1c   : > { %1143 = vmatpush1.bf16.msra.mxu0 %v1142_v56  ;;  %v255_v16 = vld [vmem:[%s2189_s1 + $0x108] sm:$0xff]  ;;  %v257_v17 = vld [vmem:[%s2189_s1 + $0x118] sm:$0xff]  ;;  %v1098_v19 = vpack.c.bf16 %v252_v13, %v250_v8  ;;  %v254_v20 = vld [vmem:[%s2189_s1 + $0x100] sm:$0xff]  ;;  %v1152_v21 = vpack.c.bf16 %v309_v15, %v307_v14 }
  0x1d   : > { %1145 = vmatprep.subr.bf16.mxu0 %v1144_v60  ;;  %v306_v22 = vld [vmem:[%s2189_s1 + $0x2a0] sm:$0xff]  ;;  %v308_v23 = vld [vmem:[%s2189_s1 + $0x2b0] sm:$0xff]  ;;  %v1100_v24 = vpack.c.bf16 %v257_v17, %v255_v16  ;;  %v311_v26 = vld [vmem:[%s2189_s1 + $0x2c8] sm:$0xff] }
  0x1e   : > { %1087 = vmatpush1.bf16.msra.mxu1 %v1086_v43  ;;  %v256_v25 = vld [vmem:[%s2189_s1 + $0x110] sm:$0xff]  ;;  %v313_v27 = vld [vmem:[%s2189_s1 + $0x2d8] sm:$0xff]  ;;  %v259_v28 = vld [vmem:[%s2189_s1 + $0x128] sm:$0xff]  ;;  %v1154_v31 = vpack.c.bf16 %v308_v23, %v306_v22 }
  0x1f   : > { %1089 = vmatprep.subr.bf16.mxu1 %v1088_v48  ;;  %v261_v29 = vld [vmem:[%s2189_s1 + $0x138] sm:$0xff]  ;;  %v258_v30 = vld [vmem:[%s2189_s1 + $0x120] sm:$0xff]  ;;  %v1102_v32 = vpack.c.bf16 %v256_v25, %v254_v20  ;;  %v1156_v33 = vpack.c.bf16 %v313_v27, %v311_v26  ;;  %v312_v35 = vld [vmem:[%s2189_s1 + $0x2d0] sm:$0xff] }
  0x20   : > { %1147 = vmatpush1.bf16.msra.mxu0 %v1146_v5  ;;  %v310_v34 = vld [vmem:[%s2189_s1 + $0x2c0] sm:$0xff]  ;;  %v175_v36 = vld [vmem:[%s1651_s18 + $0x8] sm:$0xff]  ;;  %v1104_v37 = vpack.c.bf16 %v261_v29, %v259_v28  ;;  %v260_v38 = vld [vmem:[%s2189_s1 + $0x130] sm:$0xff] }
  0x21   : > { %1149 = vmatprep.subr.bf16.mxu0 %v1148_v9  ;;  %v315_v39 = vld [vmem:[%s2189_s1 + $0x2e8] sm:$0xff]  ;;  %v317_v40 = vld [vmem:[%s2189_s1 + $0x2f8] sm:$0xff]  ;;  %382 = vmatprep.mubr.f32.mxu1 %v175_v36  ;;  %v1158_v43 = vpack.c.bf16 %v312_v35, %v310_v34  ;;  %v1106_v44 = vpack.c.bf16 %v260_v38, %v258_v30  ;;  %v314_v46 = vld [vmem:[%s2189_s1 + $0x2e0] sm:$0xff] }
  0x22   : > { %1091 = vmatpush1.bf16.msra.mxu1 %v1090_v58  ;;  %v263_v41 = vld [vmem:[%s2189_s1 + $0x148] sm:$0xff]  ;;  %v265_v42 = vld [vmem:[%s2189_s1 + $0x158] sm:$0xff]  ;;  %v1160_v45 = vpack.c.bf16 %v317_v40, %v315_v39  ;;  %v316_v47 = vld [vmem:[%s2189_s1 + $0x2f0] sm:$0xff] }
  0x23   : > { %1093 = vmatprep.subr.bf16.mxu1 %v1092_v63  ;;  %v1108_v48 = vpack.c.bf16 %v265_v42, %v263_v41  ;;  %v262_v49 = vld [vmem:[%s2189_s1 + $0x140] sm:$0xff]  ;;  %v264_v50 = vld [vmem:[%s2189_s1 + $0x150] sm:$0xff]  ;;  %v267_v51 = vld [vmem:[%s2189_s1 + $0x168] sm:$0xff]  ;;  %v1162_v53 = vpack.c.bf16 %v316_v47, %v314_v46 }
  0x24   : > { %1151 = vmatpush1.bf16.msra.mxu0 %v1150_v18  ;;  %v269_v52 = vld [vmem:[%s2189_s1 + $0x178] sm:$0xff]  ;;  %v1110_v54 = vpack.c.bf16 %v264_v50, %v262_v49  ;;  %v266_v56 = vld [vmem:[%s2189_s1 + $0x160] sm:$0xff]  ;;  %v268_v57 = vld [vmem:[%s2189_s1 + $0x170] sm:$0xff] }
  0x25   : > { %1153 = vmatprep.subr.bf16.mxu0 %v1152_v21  ;;  %v1112_v55 = vpack.c.bf16 %v269_v52, %v267_v51  ;;  %v271_v58 = vld [vmem:[%s2189_s1 + $0x188] sm:$0xff]  ;;  %v273_v59 = vld [vmem:[%s2189_s1 + $0x198] sm:$0xff]  ;;  %v176_v60 = vld [vmem:[%s1651_s18 + $0x10] sm:$0xff]  ;;  %v1114_v61 = vpack.c.bf16 %v268_v57, %v266_v56 }
  0x26   : > { %1095 = vmatpush1.bf16.msra.mxu1 %v1094_v6  ;;  %v1116_v62 = vpack.c.bf16 %v273_v59, %v271_v58  ;;  %v270_v63 = vld [vmem:[%s2189_s1 + $0x180] sm:$0xff]  ;;  %v272_v0 = vld [vmem:[%s2189_s1 + $0x190] sm:$0xff]  ;;  %v275_v1 = vld [vmem:[%s2189_s1 + $0x1a8] sm:$0xff] }
  0x27   : > { %1097 = vmatprep.subr.bf16.mxu1 %v1096_v12  ;;  %v277_v2 = vld [vmem:[%s2189_s1 + $0x1b8] sm:$0xff]  ;;  %v179_v3 = vld [vmem:[%s1651_s18 + $0x28] sm:$0xff]  ;;  %v1118_v4 = vpack.c.bf16 %v272_v0, %v270_v63  ;;  %v274_v6 = vld [vmem:[%s2189_s1 + $0x1a0] sm:$0xff] }
  0x28   : > { %1155 = vmatpush1.bf16.msra.mxu0 %v1154_v31  ;;  %v1120_v5 = vpack.c.bf16 %v277_v2, %v275_v1  ;;  %v276_v8 = vld [vmem:[%s2189_s1 + $0x1b0] sm:$0xff]  ;;  %v279_v9 = vld [vmem:[%s2189_s1 + $0x1c8] sm:$0xff]  ;;  %v281_v10 = vld [vmem:[%s2189_s1 + $0x1d8] sm:$0xff] }
  0x29   : > { %1157 = vmatprep.subr.bf16.mxu0 %v1156_v33  ;;  %v182_v11 = vld [vmem:[%s1651_s18 + $0x40] sm:$0xff]  ;;  %v1122_v12 = vpack.c.bf16 %v276_v8, %v274_v6  ;;  %v1124_v13 = vpack.c.bf16 %v281_v10, %v279_v9  ;;  %v280_v15 = vld [vmem:[%s2189_s1 + $0x1d0] sm:$0xff]  ;;  %v283_v16 = vld [vmem:[%s2189_s1 + $0x1e8] sm:$0xff] }
  0x2a   : > { %1099 = vmatpush1.bf16.msra.mxu1 %v1098_v19  ;;  %v278_v14 = vld [vmem:[%s2189_s1 + $0x1c0] sm:$0xff]  ;;  %v285_v17 = vld [vmem:[%s2189_s1 + $0x1f8] sm:$0xff]  ;;  %v284_v22 = vld [vmem:[%s2189_s1 + $0x1f0] sm:$0xff] }
  0x2b   : > { %1101 = vmatprep.subr.bf16.mxu1 %v1100_v24  ;;  %v185_v18 = vld [vmem:[%s1651_s18 + $0x58] sm:$0xff]  ;;  %v1126_v19 = vpack.c.bf16 %v280_v15, %v278_v14  ;;  %v1128_v20 = vpack.c.bf16 %v285_v17, %v283_v16  ;;  %v282_v21 = vld [vmem:[%s2189_s1 + $0x1e0] sm:$0xff]  ;;  %v188_v23 = vld [vmem:[%s1651_s18 + $0x70] sm:$0xff] }
  0x2c   : > { %1159 = vmatpush1.bf16.msra.mxu0 %v1158_v43  ;;  %v1130_v24 = vpack.c.bf16 %v284_v22, %v282_v21  ;;  %v191_v25 = vld [vmem:[%s1651_s18 + $0x88] sm:$0xff]  ;;  %v174_v26 = vld [vmem:[%s1651_s18] sm:$0xff]  ;;  %v177_v29 = vld [vmem:[%s1651_s18 + $0x18] sm:$0xff] }
  0x2d   : > { %1161 = vmatprep.subr.bf16.mxu0 %v1160_v45  ;;  %v178_v27 = vld [vmem:[%s1651_s18 + $0x20] sm:$0xff]  ;;  %v181_v30 = vld [vmem:[%s1651_s18 + $0x38] sm:$0xff]  ;;  %v184_v33 = vld [vmem:[%s1651_s18 + $0x50] sm:$0xff] }
  0x2e   : > { %1103 = vmatpush1.bf16.msra.mxu1 %v1102_v32  ;;  %v194_v28 = vld [vmem:[%s1651_s18 + $0xa0] sm:$0xff]  ;;  %v197_v31 = vld [vmem:[%s1651_s18 + $0xb8] sm:$0xff]  ;;  %v180_v32 = vld [vmem:[%s1651_s18 + $0x30] sm:$0xff] }
  0x2f   : > { %1105 = vmatprep.subr.bf16.mxu1 %v1104_v37  ;;  %v200_v34 = vld [vmem:[%s1651_s18 + $0xd0] sm:$0xff]  ;;  %v183_v35 = vld [vmem:[%s1651_s18 + $0x48] sm:$0xff]  ;;  %v186_v38 = vld [vmem:[%s1651_s18 + $0x60] sm:$0xff] }
  0x30   : > { %1163 = vmatpush1.bf16.msra.mxu0 %v1162_v53  ;;  %v187_v36 = vld [vmem:[%s1651_s18 + $0x68] sm:$0xff]  ;;  %v190_v39 = vld [vmem:[%s1651_s18 + $0x80] sm:$0xff]  ;;  %v189_v41 = vld [vmem:[%s1651_s18 + $0x78] sm:$0xff] }
  0x31   : > { %v203_v37 = vld [vmem:[%s1651_s18 + $0xe8] sm:$0xff]  ;;  %v206_v40 = vld [vmem:[%s1651_s18 + $0x100] sm:$0xff]  ;;  %v193_v42 = vld [vmem:[%s1651_s18 + $0x98] sm:$0xff] }
  0x32   : > { %1107 = vmatpush1.bf16.msra.mxu1 %v1106_v44  ;;  %v209_v43 = vld [vmem:[%s1651_s18 + $0x118] sm:$0xff]  ;;  %v192_v44 = vld [vmem:[%s1651_s18 + $0x90] sm:$0xff]  ;;  %v195_v47 = vld [vmem:[%s1651_s18 + $0xa8] sm:$0xff] }
  0x33   : > { %1109 = vmatprep.subr.bf16.mxu1 %v1108_v48  ;;  %544 = vmatmul.mubr.f32.vlgmr.msra.gmra.mrb[0].mxu0 %v176_v60  ;;  %v196_v45 = vld [vmem:[%s1651_s18 + $0xb0] sm:$0xff]  ;;  %v199_v48 = vld [vmem:[%s1651_s18 + $0xc8] sm:$0xff]  ;;  %v198_v50 = vld [vmem:[%s1651_s18 + $0xc0] sm:$0xff] }
  0x34   : > { %549 = vmatprep.mubr.f32.mxu0 %v1406_v7  ;;  %v212_v46 = vld [vmem:[%s1651_s18 + $0x130] sm:$0xff]  ;;  %v215_v49 = vld [vmem:[%s1651_s18 + $0x148] sm:$0xff]  ;;  %v202_v51 = vld [vmem:[%s1651_s18 + $0xe0] sm:$0xff] }
  0x35   : > { %v218_v52 = vld [vmem:[%s1651_s18 + $0x160] sm:$0xff]  ;;  %v201_v53 = vld [vmem:[%s1651_s18 + $0xd8] sm:$0xff]  ;;  %v204_v56 = vld [vmem:[%s1651_s18 + $0xf0] sm:$0xff] }
  0x36   : > { %1111 = vmatpush1.bf16.msra.mxu1 %v1110_v54  ;;  %v205_v54 = vld [vmem:[%s1651_s18 + $0xf8] sm:$0xff]  ;;  %v208_v57 = vld [vmem:[%s1651_s18 + $0x110] sm:$0xff]  ;;  %v207_v58 = vld [vmem:[%s1651_s18 + $0x108] sm:$0xff] }
  0x37   : > { %1113 = vmatprep.subr.bf16.mxu1 %v1112_v55  ;;  %550 = vmatmul.mubr.f32.gmra.mrb[2].mxu0 %v179_v3  ;;  %v221_v55 = vld [vmem:[%s1651_s18 + $0x178] sm:$0xff]  ;;  %v211_v59 = vld [vmem:[%s1651_s18 + $0x128] sm:$0xff]  ;;  %v210_v60 = vld [vmem:[%s1651_s18 + $0x120] sm:$0xff] }
  0x38   : > { %555 = vmatprep.mubr.f32.mxu0 %v1406_v7  ;;  %v216_v63 = vld [vmem:[%s1651_s18 + $0x150] sm:$0xff]  ;;  %v219_v1 = vld [vmem:[%s1651_s18 + $0x168] sm:$0xff] }
  0x39   : > { %v220_v0 = vld [vmem:[%s1651_s18 + $0x170] sm:$0xff] }
  0x3a   : > { %1115 = vmatpush1.bf16.msra.mxu1 %v1114_v61  ;;  %v214_v61 = vld [vmem:[%s1651_s18 + $0x140] sm:$0xff] }
  0x3b   : > { %1117 = vmatprep.subr.bf16.mxu1 %v1116_v62  ;;  %556 = vmatmul.mubr.f32.gmra.mrb[4].mxu0 %v182_v11  ;;  %v217_v62 = vld [vmem:[%s1651_s18 + $0x158] sm:$0xff] }
  0x3c   : > { %561 = vmatprep.mubr.f32.mxu0 %v1406_v7 }
  0x3e   : > { %1119 = vmatpush1.bf16.msra.mxu1 %v1118_v4 }
  0x3f   : > { %1121 = vmatprep.subr.bf16.mxu1 %v1120_v5  ;;  %562 = vmatmul.mubr.f32.gmra.mrb[6].mxu0 %v185_v18 }
  0x40   : > { %567 = vmatprep.mubr.f32.mxu0 %v1406_v7 }
  0x42   : > { %1123 = vmatpush1.bf16.msra.mxu1 %v1122_v12 }
  0x43   : > { %1125 = vmatprep.subr.bf16.mxu1 %v1124_v13  ;;  %568 = vmatmul.mubr.f32.gmra.mrb[8].mxu0 %v188_v23 }
  0x44   : > { %573 = vmatprep.mubr.f32.mxu0 %v1406_v7 }
  0x46   : > { %1127 = vmatpush1.bf16.msra.mxu1 %v1126_v19 }
  0x47   : > { %1129 = vmatprep.subr.bf16.mxu1 %v1128_v20  ;;  %574 = vmatmul.mubr.f32.gmra.mrb[10].mxu0 %v191_v25 }
  0x48   : > { %579 = vmatprep.mubr.f32.mxu0 %v1406_v7 }
  0x4a   : > { %1131 = vmatpush1.bf16.msra.mxu1 %v1130_v24 }
  0x4b   : > { %580 = vmatmul.mubr.f32.gmra.mrb[12].mxu0 %v194_v28 }
  0x4c   : > { %585 = vmatprep.mubr.f32.mxu0 %v1406_v7 }
  0x4d   : > { %383 = vmatmul.mubr.f32.vlgmr.msra.gmra.mrb[0].mxu1 %v174_v26 }
  0x4e   : > { %388 = vmatprep.mubr.f32.mxu1 %v178_v27 }
  0x4f   : > { %586 = vmatmul.mubr.f32.gmra.mrb[14].mxu0 %v197_v31 }
  0x50   : > { %591 = vmatprep.mubr.f32.mxu0 %v1406_v7 }
  0x51   : > { %389 = vmatmul.mubr.f32.gmra.mrb[2].mxu1 %v177_v29 }
  0x52   : > { %394 = vmatprep.mubr.f32.mxu1 %v181_v30 }
  0x53   : > { %592 = vmatmul.mubr.f32.gmra.mrb[16].mxu0 %v200_v34 }
  0x54   : > { %597 = vmatprep.mubr.f32.mxu0 %v1406_v7 }
  0x55   : > { %395 = vmatmul.mubr.f32.gmra.mrb[4].mxu1 %v180_v32 }
  0x56   : > { %400 = vmatprep.mubr.f32.mxu1 %v184_v33 }
  0x57   : > { %598 = vmatmul.mubr.f32.gmra.mrb[18].mxu0 %v203_v37 }
  0x58   : > { %603 = vmatprep.mubr.f32.mxu0 %v1406_v7 }
  0x59   : > { %401 = vmatmul.mubr.f32.gmra.mrb[6].mxu1 %v183_v35 }
  0x5a   : > { %406 = vmatprep.mubr.f32.mxu1 %v187_v36 }
  0x5b   : > { %604 = vmatmul.mubr.f32.gmra.mrb[20].mxu0 %v206_v40 }
  0x5c   : > { %609 = vmatprep.mubr.f32.mxu0 %v1406_v7 }
  0x5d   : > { %407 = vmatmul.mubr.f32.gmra.mrb[8].mxu1 %v186_v38 }
  0x5e   : > { %412 = vmatprep.mubr.f32.mxu1 %v190_v39 }
  0x5f   : > { %610 = vmatmul.mubr.f32.gmra.mrb[22].mxu0 %v209_v43 }
  0x60   : > { %615 = vmatprep.mubr.f32.mxu0 %v1406_v7 }
  0x61   : > { %413 = vmatmul.mubr.f32.gmra.mrb[10].mxu1 %v189_v41 }
  0x62   : > { %418 = vmatprep.mubr.f32.mxu1 %v193_v42 }
  0x63   : > { %616 = vmatmul.mubr.f32.gmra.mrb[24].mxu0 %v212_v46 }
  0x64   : > { %621 = vmatprep.mubr.f32.mxu0 %v1406_v7 }
  0x65   : > { %419 = vmatmul.mubr.f32.gmra.mrb[12].mxu1 %v192_v44 }
  0x66   : > { %424 = vmatprep.mubr.f32.mxu1 %v196_v45 }
  0x67   : > { %622 = vmatmul.mubr.f32.gmra.mrb[26].mxu0 %v215_v49 }
  0x68   : > { %627 = vmatprep.mubr.f32.mxu0 %v1406_v7 }
  0x69   : > { %425 = vmatmul.mubr.f32.gmra.mrb[14].mxu1 %v195_v47 }
  0x6a   : > { %430 = vmatprep.mubr.f32.mxu1 %v199_v48 }
  0x6b   : > { %628 = vmatmul.mubr.f32.gmra.mrb[28].mxu0 %v218_v52 }
  0x6c   : > { %633 = vmatprep.mubr.f32.mxu0 %v1406_v7  ;;  %v213_v7 = vld [vmem:[%s1651_s18 + $0x138] sm:$0xff]  ;;  %s148_s18 = sand.u32 1, %s1364_s9   ;;  %s825_s9 = ssub.s32 (%p1447_p4), 25, %s1540_s4 }
  0x6d   : > { %431 = vmatmul.mubr.f32.gmra.mrb[16].mxu1 %v198_v50  ;;  %s1041_s28 = sshll.u32 %s148_s18, 8  ;;  %p826_p8 = scmp.lt.s32.totalorder (%p1447_p4), %s825_s9, 16 }
  0x6e   : > { %436 = vmatprep.mubr.f32.mxu1 %v202_v51  ;;  %s1965_s24 = scalar_lea.vmem [#allocation2], %s1041_s28  }
  0x6f   : > { %634 = vmatmul.mubr.f32.gmra.mrb[30].mxu0 %v221_v55 }
  0x71   : > { %437 = vmatmul.mubr.f32.gmra.mrb[18].mxu1 %v201_v53 }
  0x72   : > { %442 = vmatprep.mubr.f32.mxu1 %v205_v54 }
  0x75   : > { %443 = vmatmul.mubr.f32.gmra.mrb[20].mxu1 %v204_v56 }
  0x76   : > { %448 = vmatprep.mubr.f32.mxu1 %v208_v57 }
  0x79   : > { %449 = vmatmul.mubr.f32.gmra.mrb[22].mxu1 %v207_v58 }
  0x7a   : > { %454 = vmatprep.mubr.f32.mxu1 %v211_v59 }
  0x7d   : > { %455 = vmatmul.mubr.f32.gmra.mrb[24].mxu1 %v210_v60 }
  0x7e   : > { %460 = vmatprep.mubr.f32.mxu1 %v214_v61 }
  0x81   : > { %461 = vmatmul.mubr.f32.gmra.mrb[26].mxu1 %v213_v7 }
  0x82   : > { %466 = vmatprep.mubr.f32.mxu1 %v217_v62 }
  0x85   : > { %467 = vmatmul.mubr.f32.gmra.mrb[28].mxu1 %v216_v63 }
  0x86   : > { %472 = vmatprep.mubr.f32.mxu1 %v220_v0 }
  0x89   : > { %473 = vmatmul.mubr.f32.gmra.mrb[30].mxu1 %v219_v1 }
 0x106   : > { %v545_v2 = vpop.f32.mrb[0].mxu0 }
 0x107   : > { %v547_v3 = vpop.f32.mrb[1].mxu0 }
 0x10a   : > { %v551_v4 = vpop.f32.mrb[2].mxu0 }
 0x10b   : > { %v553_v5 = vpop.f32.mrb[3].mxu0 }
 0x10e   : > { %v557_v6 = vpop.f32.mrb[4].mxu0 }
 0x10f   : > { %v559_v8 = vpop.f32.mrb[5].mxu0 }
 0x112   : > { %v563_v9 = vpop.f32.mrb[6].mxu0 }
 0x113   : > { %v565_v10 = vpop.f32.mrb[7].mxu0 }
 0x116   : > { %v569_v11 = vpop.f32.mrb[8].mxu0 }
 0x117   : > { %v571_v12 = vpop.f32.mrb[9].mxu0 }
 0x11a   : > { %v575_v13 = vpop.f32.mrb[10].mxu0 }
 0x11b   : > { %v577_v15 = vpop.f32.mrb[11].mxu0 }
 0x11e   : > { %v581_v19 = vpop.f32.mrb[12].mxu0 }
 0x11f   : > { %v583_v22 = vpop.f32.mrb[13].mxu0 }
 0x120   : > { %v384_v14 = vpop.f32.mrb[0].mxu1 }
 0x121   : > { %v1818_v16 = vadd.f32 %v545_v2, %v384_v14  ;;  %v386_v17 = vpop.f32.mrb[1].mxu1 }
 0x122   : > { %v1820_v18 = vadd.f32 %v547_v3, %v386_v17  ;;  %v587_v29 = vpop.f32.mrb[14].mxu0 }
 0x123   : > { %v640_v25 = vmul.f32 %v1818_v16, %v1818_v16  ;;  %v589_v32 = vpop.f32.mrb[15].mxu0 }
 0x124   : > { %v641_v20 = vmul.f32 %v1820_v18, %v1820_v18  ;;  %v390_v21 = vpop.f32.mrb[2].mxu1 }
 0x125   : > { %v1824_v23 = vadd.f32 %v551_v4, %v390_v21  ;;  %v392_v24 = vpop.f32.mrb[3].mxu1 }
 0x126   : > { %v1828_v26 = vadd.f32 %v553_v5, %v392_v24  ;;  %v673_v27 = vsel %vm672_vm0, %v641_v20, 0.0  ;;  %v593_v39 = vpop.f32.mrb[16].mxu0 }
 0x127   : > { %v674_v28 = vadd.f32 %v673_v27, %v640_v25  ;;  %v642_v33 = vmul.f32 %v1824_v23, %v1824_v23  ;;  %v595_v42 = vpop.f32.mrb[17].mxu0 }
 0x128   : > { %v643_v30 = vmul.f32 %v1828_v26, %v1828_v26  ;;  %v396_v31 = vpop.f32.mrb[4].mxu1 }
 0x129   : > { %v1835_v34 = vadd.f32 %v557_v6, %v396_v31  ;;  %675 = vadd.xlane.f32.xlu0 %v674_v28  ;;  %v398_v35 = vpop.f32.mrb[5].mxu1 }
 0x12a   : > { %v1837_v36 = vadd.f32 %v559_v8, %v398_v35  ;;  %v677_v37 = vsel %vm672_vm0, %v643_v30, 0.0  ;;  %v599_v49 = vpop.f32.mrb[18].mxu0 }
 0x12b   : > { %v678_v38 = vadd.f32 %v677_v37, %v642_v33  ;;  %v644_v45 = vmul.f32 %v1835_v34, %v1835_v34  ;;  %v601_v52 = vpop.f32.mrb[19].mxu0 }
 0x12c   : > { %v645_v40 = vmul.f32 %v1837_v36, %v1837_v36  ;;  %v402_v41 = vpop.f32.mrb[6].mxu1 }
 0x12d   : > { %v1842_v43 = vadd.f32 %v563_v9, %v402_v41  ;;  %679 = vadd.xlane.f32.xlu0 %v678_v38  ;;  %v404_v44 = vpop.f32.mrb[7].mxu1 }
 0x12e   : > { %v1846_v46 = vadd.f32 %v565_v10, %v404_v44  ;;  %v681_v47 = vsel %vm672_vm0, %v645_v40, 0.0  ;;  %v605_v59 = vpop.f32.mrb[20].mxu0 }
 0x12f   : > { %v682_v48 = vadd.f32 %v681_v47, %v644_v45  ;;  %v646_v53 = vmul.f32 %v1842_v43, %v1842_v43  ;;  %v607_v7 = vpop.f32.mrb[21].mxu0 }
 0x130   : > { %v647_v50 = vmul.f32 %v1846_v46, %v1846_v46  ;;  %v408_v51 = vpop.f32.mrb[8].mxu1 }
 0x131   : > { %v1853_v54 = vadd.f32 %v569_v11, %v408_v51  ;;  %683 = vadd.xlane.f32.xlu1 %v682_v48  ;;  %v410_v55 = vpop.f32.mrb[9].mxu1 }
 0x132   : > { %v1855_v56 = vadd.f32 %v571_v12, %v410_v55  ;;  %v685_v57 = vsel %vm672_vm0, %v647_v50, 0.0  ;;  %v611_v4 = vpop.f32.mrb[22].mxu0 }
 0x133   : > { %v686_v58 = vadd.f32 %v685_v57, %v646_v53  ;;  %v648_v62 = vmul.f32 %v1853_v54, %v1853_v54  ;;  %v613_v8 = vpop.f32.mrb[23].mxu0 }
 0x134   : > { %v649_v60 = vmul.f32 %v1855_v56, %v1855_v56  ;;  %v414_v61 = vpop.f32.mrb[10].mxu1 }
 0x135   : > { %v1862_v63 = vadd.f32 %v575_v13, %v414_v61  ;;  %687 = vadd.xlane.f32.xlu1 %v686_v58  ;;  %v416_v0 = vpop.f32.mrb[11].mxu1 }
 0x136   : > { %v1864_v1 = vadd.f32 %v577_v15, %v416_v0  ;;  %v689_v2 = vsel %vm672_vm0, %v649_v60, 0.0  ;;  %v617_v15 = vpop.f32.mrb[24].mxu0 }
 0x137   : > { %v690_v3 = vadd.f32 %v689_v2, %v648_v62  ;;  %v650_v9 = vmul.f32 %v1862_v63, %v1862_v63  ;;  %v619_v21 = vpop.f32.mrb[25].mxu0 }
 0x138   : > { %v651_v5 = vmul.f32 %v1864_v1, %v1864_v1  ;;  %v420_v6 = vpop.f32.mrb[12].mxu1 }
 0x139   : > { %v1871_v10 = vadd.f32 %v581_v19, %v420_v6  ;;  %691 = vadd.xlane.f32.xlu0 %v690_v3  ;;  %v422_v11 = vpop.f32.mrb[13].mxu1 }
 0x13a   : > { %v1873_v12 = vadd.f32 %v583_v22, %v422_v11  ;;  %v693_v13 = vsel %vm672_vm0, %v651_v5, 0.0  ;;  %v623_v30 = vpop.f32.mrb[26].mxu0 }
 0x13b   : > { %v694_v14 = vadd.f32 %v693_v13, %v650_v9  ;;  %v652_v24 = vmul.f32 %v1871_v10, %v1871_v10  ;;  %v625_v35 = vpop.f32.mrb[27].mxu0 }
 0x13c   : > { %v653_v17 = vmul.f32 %v1873_v12, %v1873_v12  ;;  %v426_v20 = vpop.f32.mrb[14].mxu1 }
 0x13d   : > { %v1880_v25 = vadd.f32 %v587_v29, %v426_v20  ;;  %695 = vadd.xlane.f32.xlu1 %v694_v14  ;;  %v428_v19 = vpop.f32.mrb[15].mxu1 }
 0x13e   : > { %v1882_v27 = vadd.f32 %v589_v32, %v428_v19  ;;  %v697_v22 = vsel %vm672_vm0, %v653_v17, 0.0  ;;  %v629_v44 = vpop.f32.mrb[28].mxu0 }
 0x13f   : > { %v698_v28 = vadd.f32 %v697_v22, %v652_v24  ;;  %v654_v37 = vmul.f32 %v1880_v25, %v1880_v25  ;;  %v631_v48 = vpop.f32.mrb[29].mxu0 }
 0x140   : > { %v655_v31 = vmul.f32 %v1882_v27, %v1882_v27  ;;  %v432_v33 = vpop.f32.mrb[16].mxu1 }
 0x141   : > { %v1889_v38 = vadd.f32 %v593_v39, %v432_v33  ;;  %699 = vadd.xlane.f32.xlu0 %v698_v28  ;;  %v434_v29 = vpop.f32.mrb[17].mxu1 }
 0x142   : > { %v1891_v40 = vadd.f32 %v595_v42, %v434_v29  ;;  %v701_v32 = vsel %vm672_vm0, %v655_v31, 0.0  ;;  %v635_v57 = vpop.f32.mrb[30].mxu0 }
 0x143   : > { %v702_v41 = vadd.f32 %v701_v32, %v654_v37  ;;  %v656_v50 = vmul.f32 %v1889_v38, %v1889_v38  ;;  %v637_v61 = vpop.f32.mrb[31].mxu0 }
 0x144   : > { %v657_v45 = vmul.f32 %v1891_v40, %v1891_v40  ;;  %v438_v47 = vpop.f32.mrb[18].mxu1 }
 0x145   : > { %v1898_v51 = vadd.f32 %v599_v49, %v438_v47  ;;  %703 = vadd.xlane.f32.xlu1 %v702_v41  ;;  %v440_v39 = vpop.f32.mrb[19].mxu1 }
 0x146   : > { %v1900_v53 = vadd.f32 %v601_v52, %v440_v39  ;;  %v705_v42 = vsel %vm672_vm0, %v657_v45, 0.0 }
 0x147   : > { %v706_v55 = vadd.f32 %v705_v42, %v656_v50  ;;  %v658_v62 = vmul.f32 %v1898_v51, %v1898_v51 }
 0x148   : > { %v659_v58 = vmul.f32 %v1900_v53, %v1900_v53  ;;  %v444_v60 = vpop.f32.mrb[20].mxu1 }
 0x149   : > { %v1907_v0 = vadd.f32 %v605_v59, %v444_v60  ;;  %707 = vadd.xlane.f32.xlu0 %v706_v55  ;;  %v446_v49 = vpop.f32.mrb[21].mxu1 }
 0x14a   : > { %v1909_v2 = vadd.f32 %v607_v7, %v446_v49  ;;  %v709_v52 = vsel %vm672_vm0, %v659_v58, 0.0 }
 0x14b   : > { %v710_v3 = vadd.f32 %v709_v52, %v658_v62  ;;  %v660_v9 = vmul.f32 %v1907_v0, %v1907_v0 }
 0x14c   : > { %v661_v5 = vmul.f32 %v1909_v2, %v1909_v2  ;;  %v450_v6 = vpop.f32.mrb[22].mxu1 }
 0x14d   : > { %v1916_v11 = vadd.f32 %v611_v4, %v450_v6  ;;  %711 = vadd.xlane.f32.xlu1 %v710_v3  ;;  %v452_v13 = vpop.f32.mrb[23].mxu1 }
 0x14e   : > { %v1918_v59 = vadd.f32 %v613_v8, %v452_v13  ;;  %v713_v14 = vsel %vm672_vm0, %v661_v5, 0.0 }
 0x14f   : > { %v714_v7 = vadd.f32 %v713_v14, %v660_v9  ;;  %v662_v24 = vmul.f32 %v1916_v11, %v1916_v11 }
 0x150   : > { %v663_v17 = vmul.f32 %v1918_v59, %v1918_v59  ;;  %v456_v20 = vpop.f32.mrb[24].mxu1 }
 0x151   : > { %v1925_v19 = vadd.f32 %v617_v15, %v456_v20  ;;  %715 = vadd.xlane.f32.xlu0 %v714_v7  ;;  %v458_v22 = vpop.f32.mrb[25].mxu1 }
 0x152   : > { %v1927_v4 = vadd.f32 %v619_v21, %v458_v22  ;;  %v717_v28 = vsel %vm672_vm0, %v663_v17, 0.0 }
 0x153   : > { %v718_v8 = vadd.f32 %v717_v28, %v662_v24  ;;  %v664_v37 = vmul.f32 %v1925_v19, %v1925_v19 }
 0x154   : > { %v665_v31 = vmul.f32 %v1927_v4, %v1927_v4  ;;  %v462_v33 = vpop.f32.mrb[26].mxu1 }
 0x155   : > { %v1934_v29 = vadd.f32 %v623_v30, %v462_v33  ;;  %719 = vadd.xlane.f32.xlu1 %v718_v8  ;;  %v464_v32 = vpop.f32.mrb[27].mxu1 }
 0x156   : > { %v1936_v15 = vadd.f32 %v625_v35, %v464_v32  ;;  %v721_v41 = vsel %vm672_vm0, %v665_v31, 0.0 }
 0x157   : > { %v722_v21 = vadd.f32 %v721_v41, %v664_v37  ;;  %v666_v50 = vmul.f32 %v1934_v29, %v1934_v29 }
 0x158   : > { %v667_v45 = vmul.f32 %v1936_v15, %v1936_v15  ;;  %v468_v47 = vpop.f32.mrb[28].mxu1 }
 0x159   : > { %v1943_v39 = vadd.f32 %v629_v44, %v468_v47  ;;  %723 = vadd.xlane.f32.xlu0 %v722_v21  ;;  %v470_v42 = vpop.f32.mrb[29].mxu1 }
 0x15a   : > { %v1945_v30 = vadd.f32 %v631_v48, %v470_v42  ;;  %v725_v55 = vsel %vm672_vm0, %v667_v45, 0.0 }
 0x15b   : > { %v726_v35 = vadd.f32 %v725_v55, %v666_v50  ;;  %v668_v62 = vmul.f32 %v1943_v39, %v1943_v39 }
 0x15c   : > { %v669_v58 = vmul.f32 %v1945_v30, %v1945_v30  ;;  %v474_v60 = vpop.f32.mrb[30].mxu1 }
 0x15d   : > { %v1952_v49 = vadd.f32 %v635_v57, %v474_v60  ;;  %727 = vadd.xlane.f32.xlu1 %v726_v35  ;;  %v476_v44 = vpop.f32.mrb[31].mxu1 }
 0x15e   : > { %v1954_v52 = vadd.f32 %v637_v61, %v476_v44  ;;  %v729_v48 = vsel %vm672_vm0, %v669_v58, 0.0 }
 0x15f   : > { %v730_v3 = vadd.f32 %v729_v48, %v668_v62  ;;  %v670_v6 = vmul.f32 %v1952_v49, %v1952_v49 }
 0x160   : > { %v671_v5 = vmul.f32 %v1954_v52, %v1954_v52 }
 0x161   : > { %731 = vadd.xlane.f32.xlu0 %v730_v3 }
 0x162   : > { %v733_v9 = vsel %vm672_vm0, %v671_v5, 0.0 }
 0x163   : > { %v734_v13 = vadd.f32 %v733_v9, %v670_v6 }
 0x165   : > { %735 = vadd.xlane.f32.xlu1 %v734_v13 }
 0x1b6   : > { %v676_v57 = vpop.xlane.xlu0 %675 }
 0x1b7   : > { %1286 = vrsqrt.f32 %v676_v57 }
 0x1ba   : > { %v680_v14 = vpop.xlane.xlu0 %679 }
 0x1bb   : > { %1288 = vrsqrt.f32 %v680_v14 }
 0x1be   : > { %v684_v61 = vpop.xlane.xlu1 %683 }
 0x1bf   : > { %1290 = vrsqrt.f32 %v684_v61 }
 0x1c1   : > { %v1287_v7 = vpop.eup %1286 }
 0x1c2   : > { %v753_v17 = vmul.f32 %v1287_v7, %v1818_v16  ;;  %v754_v20 = vmul.f32 %v1287_v7, %v1820_v18  ;;  %v688_v24 = vpop.xlane.xlu1 %687 }
 0x1c3   : > { %1292 = vrsqrt.f32 %v688_v24 }
 0x1c4   : > { %785 = vst [vmem:[%s1965_s24] sm:$0xff] %v753_v17  ;;  %786 = vst.msk [vmem:[%s1965_s24 + $0x8] sm:$0xff] %vm672_vm0, %v754_v20 }
 0x1c5   : > { %v1289_v22 = vpop.eup %1288 }
 0x1c6   : > { %v755_v28 = vmul.f32 %v1289_v22, %v1824_v23  ;;  %v756_v16 = vmul.f32 %v1289_v22, %v1828_v26  ;;  %v692_v8 = vpop.xlane.xlu0 %691 }
 0x1c7   : > { %1294 = vrsqrt.f32 %v692_v8 }
 0x1c8   : > { %787 = vst [vmem:[%s1965_s24 + $0x10] sm:$0xff] %v755_v28  ;;  %788 = vst.msk [vmem:[%s1965_s24 + $0x18] sm:$0xff] %vm672_vm0, %v756_v16 }
 0x1c9   : > { %v1291_v18 = vpop.eup %1290 }
 0x1ca   : > { %v757_v31 = vmul.f32 %v1291_v18, %v1835_v34  ;;  %v758_v33 = vmul.f32 %v1291_v18, %v1837_v36  ;;  %v696_v37 = vpop.xlane.xlu1 %695 }
 0x1cb   : > { %1296 = vrsqrt.f32 %v696_v37 }
 0x1cc   : > { %789 = vst [vmem:[%s1965_s24 + $0x20] sm:$0xff] %v757_v31  ;;  %790 = vst.msk [vmem:[%s1965_s24 + $0x28] sm:$0xff] %vm672_vm0, %v758_v33 }
 0x1cd   : > { %v1293_v23 = vpop.eup %1292 }
 0x1ce   : > { %v759_v26 = vmul.f32 %v1293_v23, %v1842_v43  ;;  %v760_v32 = vmul.f32 %v1293_v23, %v1846_v46  ;;  %v700_v41 = vpop.xlane.xlu0 %699 }
 0x1cf   : > { %1298 = vrsqrt.f32 %v700_v41 }
 0x1d0   : > { %791 = vst [vmem:[%s1965_s24 + $0x30] sm:$0xff] %v759_v26  ;;  %792 = vst.msk [vmem:[%s1965_s24 + $0x38] sm:$0xff] %vm672_vm0, %v760_v32 }
 0x1d1   : > { %v1295_v34 = vpop.eup %1294 }
 0x1d2   : > { %v761_v36 = vmul.f32 %v1295_v34, %v1853_v54  ;;  %v762_v21 = vmul.f32 %v1295_v34, %v1855_v56  ;;  %v704_v45 = vpop.xlane.xlu1 %703 }
 0x1d3   : > { %1300 = vrsqrt.f32 %v704_v45 }
 0x1d4   : > { %793 = vst [vmem:[%s1965_s24 + $0x40] sm:$0xff] %v761_v36  ;;  %794 = vst.msk [vmem:[%s1965_s24 + $0x48] sm:$0xff] %vm672_vm0, %v762_v21 }
 0x1d5   : > { %v1297_v43 = vpop.eup %1296 }
 0x1d6   : > { %v763_v46 = vmul.f32 %v1297_v43, %v1862_v63  ;;  %v764_v47 = vmul.f32 %v1297_v43, %v1864_v1  ;;  %v708_v50 = vpop.xlane.xlu0 %707 }
 0x1d7   : > { %1302 = vrsqrt.f32 %v708_v50 }
 0x1d8   : > { %795 = vst [vmem:[%s1965_s24 + $0x50] sm:$0xff] %v763_v46  ;;  %796 = vst.msk [vmem:[%s1965_s24 + $0x58] sm:$0xff] %vm672_vm0, %v764_v47 }
 0x1d9   : > { %v1299_v54 = vpop.eup %1298 }
 0x1da   : > { %v765_v56 = vmul.f32 %v1299_v54, %v1871_v10  ;;  %v766_v42 = vmul.f32 %v1299_v54, %v1873_v12  ;;  %v712_v55 = vpop.xlane.xlu1 %711 }
 0x1db   : > { %1304 = vrsqrt.f32 %v712_v55 }
 0x1dc   : > { %797 = vst [vmem:[%s1965_s24 + $0x60] sm:$0xff] %v765_v56  ;;  %798 = vst.msk [vmem:[%s1965_s24 + $0x68] sm:$0xff] %vm672_vm0, %v766_v42 }
 0x1dd   : > { %v1301_v63 = vpop.eup %1300 }
 0x1de   : > { %v767_v1 = vmul.f32 %v1301_v63, %v1880_v25  ;;  %v768_v35 = vmul.f32 %v1301_v63, %v1882_v27  ;;  %v716_v58 = vpop.xlane.xlu0 %715 }
 0x1df   : > { %1306 = vrsqrt.f32 %v716_v58 }
 0x1e0   : > { %799 = vst [vmem:[%s1965_s24 + $0x70] sm:$0xff] %v767_v1  ;;  %800 = vst.msk [vmem:[%s1965_s24 + $0x78] sm:$0xff] %vm672_vm0, %v768_v35 }
 0x1e1   : > { %v1303_v10 = vpop.eup %1302 }
 0x1e2   : > { %v769_v12 = vmul.f32 %v1303_v10, %v1889_v38  ;;  %v770_v60 = vmul.f32 %v1303_v10, %v1891_v40  ;;  %v720_v62 = vpop.xlane.xlu1 %719 }
 0x1e3   : > { %1308 = vrsqrt.f32 %v720_v62 }
 0x1e4   : > { %801 = vst [vmem:[%s1965_s24 + $0x80] sm:$0xff] %v769_v12  ;;  %802 = vst.msk [vmem:[%s1965_s24 + $0x88] sm:$0xff] %vm672_vm0, %v770_v60 }
 0x1e5   : > { %v1305_v25 = vpop.eup %1304 }
 0x1e6   : > { %v771_v27 = vmul.f32 %v1305_v25, %v1898_v51  ;;  %v772_v44 = vmul.f32 %v1305_v25, %v1900_v53  ;;  %v724_v48 = vpop.xlane.xlu0 %723 }
 0x1e7   : > { %1310 = vrsqrt.f32 %v724_v48 }
 0x1e8   : > { %803 = vst [vmem:[%s1965_s24 + $0x90] sm:$0xff] %v771_v27  ;;  %804 = vst.msk [vmem:[%s1965_s24 + $0x98] sm:$0xff] %vm672_vm0, %v772_v44 }
 0x1e9   : > { %v1307_v38 = vpop.eup %1306 }
 0x1ea   : > { %v773_v40 = vmul.f32 %v1307_v38, %v1907_v0  ;;  %v774_v3 = vmul.f32 %v1307_v38, %v1909_v2  ;;  %v728_v5 = vpop.xlane.xlu1 %727 }
 0x1eb   : > { %1312 = vrsqrt.f32 %v728_v5 }
 0x1ec   : > { %805 = vst [vmem:[%s1965_s24 + $0xa0] sm:$0xff] %v773_v40  ;;  %806 = vst.msk [vmem:[%s1965_s24 + $0xa8] sm:$0xff] %vm672_vm0, %v774_v3 }
 0x1ed   : > { %v1309_v51 = vpop.eup %1308 }
 0x1ee   : > { %v775_v53 = vmul.f32 %v1309_v51, %v1916_v11  ;;  %v776_v6 = vmul.f32 %v1309_v51, %v1918_v59  ;;  %v732_v9 = vpop.xlane.xlu0 %731 }
 0x1ef   : > { %1314 = vrsqrt.f32 %v732_v9 }
 0x1f0   : > { %807 = vst [vmem:[%s1965_s24 + $0xb0] sm:$0xff] %v775_v53  ;;  %808 = vst.msk [vmem:[%s1965_s24 + $0xb8] sm:$0xff] %vm672_vm0, %v776_v6 }
 0x1f1   : > { %v1311_v0 = vpop.eup %1310 }
 0x1f2   : > { %v777_v2 = vmul.f32 %v1311_v0, %v1925_v19  ;;  %v778_v13 = vmul.f32 %v1311_v0, %v1927_v4  ;;  %v736_v57 = vpop.xlane.xlu1 %735 }
 0x1f3   : > { %1316 = vrsqrt.f32 %v736_v57 }
 0x1f4   : > { %809 = vst [vmem:[%s1965_s24 + $0xc0] sm:$0xff] %v777_v2  ;;  %810 = vst.msk [vmem:[%s1965_s24 + $0xc8] sm:$0xff] %vm672_vm0, %v778_v13 }
 0x1f5   : > { %v1313_v11 = vpop.eup %1312 }
 0x1f6   : > { %v779_v59 = vmul.f32 %v1313_v11, %v1934_v29  ;;  %v780_v14 = vmul.f32 %v1313_v11, %v1936_v15 }
 0x1f8   : > { %811 = vst [vmem:[%s1965_s24 + $0xd0] sm:$0xff] %v779_v59  ;;  %812 = vst.msk [vmem:[%s1965_s24 + $0xd8] sm:$0xff] %vm672_vm0, %v780_v14 }
 0x1f9   : > { %v1315_v61 = vpop.eup %1314 }
 0x1fa   : > { %v781_v19 = vmul.f32 %v1315_v61, %v1943_v39  ;;  %v782_v4 = vmul.f32 %v1315_v61, %v1945_v30  ;;  %823 = sbr.rel (!%p1447_p4) target bundleno = 569 (0x239), region = 32 }
 0x1fc   : > { %813 = vst [vmem:[%s1965_s24 + $0xe0] sm:$0xff] %v781_v19  ;;  %814 = vst.msk [vmem:[%s1965_s24 + $0xe8] sm:$0xff] %vm672_vm0, %v782_v4 }
 0x1fd   : > { %v1317_v7 = vpop.eup %1316 }
 0x1fe   : > { %v783_v17 = vmul.f32 %v1317_v7, %v1952_v49  ;;  %v784_v20 = vmul.f32 %v1317_v7, %v1954_v52 }
 0x200   : > { %815 = vst [vmem:[%s1965_s24 + $0xf0] sm:$0xff] %v783_v17  ;;  %816 = vst.msk [vmem:[%s1965_s24 + $0xf8] sm:$0xff] %vm672_vm0, %v784_v20 }
 0x201   : > { %s2201_s9 = smov (!%p826_p8, %s825_s9), 16 }
 0x202   : > { %s1063_s6 = sshll.u32 %s2201_s9, 8 }
 0x203   : > { %p1051_p9 = scmp.eq.s32.totalorder %s1063_s6, 0 }
 0x204   : > { %s2058_s7 = sshrl.u32 (!%p1051_p9), %s2201_s9, 4 }
 0x205   : > { %836 = sbr.rel (%p1051_p9) target bundleno = 569 (0x239), region = 36  ;;  %p1052_p10 = scmp.le.s32.totalorder (!%p1051_p9), %s2058_s7, 0 }
 0x20c   : > { %993 = sbr.rel (%p1052_p10) target bundleno = 548 (0x224), region = 84  ;;  %s2192_s12 = smov (!%p1052_p10), %s2052_s5 }
 0x20d   : > { %s2193_s17 = smov (!%p1052_p10), %s1965_s24  ;;  %s2067_s4 = smov (!%p1052_p10), 0  }
 0x20e   : > { %s2069_s8 = smov (!%p1052_p10), 0  }
 0x213 LB: >> { %v849_v29 = vld [vmem:[%s1380_s17] sm:$0xff]  ;;  %v851_v15 = vld [vmem:[%s1380_s17 + $0x10] sm:$0xff]  ;;  %s913_s11 = sadd.s32 1, %s1384_s4  ;;  %v881_v26 = vld [vmem:[%s1380_s17 + $0x8] sm:$0xff]  ;;  %s843_s8 = sadd.s32 1, %s1388_s8   ;;  %s1388_s8 = sphi %s2069_s8, %s843_s8   ;;  %s1384_s4 = sphi %s2067_s4, %s2196_s4   ;;  %s1380_s17 = sphi %s2193_s17, %s2195_s17   ;;  %s1376_s12 = sphi %s2192_s12, %s2194_s12  }
 0x214   : >> { %v853_v39 = vld [vmem:[%s1380_s17 + $0x20] sm:$0xff]  ;;  %850 = vst [vmem:[%s1376_s12] sm:$0xff] %v849_v29  ;;  %852 = vst [vmem:[%s1376_s12 + $0x10] sm:$0xff] %v851_v15  ;;  %v855_v30 = vld [vmem:[%s1380_s17 + $0x30] sm:$0xff]  ;;  %p914_p11 = scmp.ge.s32.totalorder %s913_s11, %s2058_s7  ;;  %p842_p12 = scmp.ge.s32.totalorder %s843_s8, %s2058_s7 }
 0x215   : >> { %854 = vst [vmem:[%s1376_s12 + $0x20] sm:$0xff] %v853_v39  ;;  %v857_v49 = vld [vmem:[%s1380_s17 + $0x40] sm:$0xff]  ;;  %v859_v52 = vld [vmem:[%s1380_s17 + $0x50] sm:$0xff]  ;;  %856 = vst [vmem:[%s1376_s12 + $0x30] sm:$0xff] %v855_v30 }
 0x216   : >> { %858 = vst [vmem:[%s1376_s12 + $0x40] sm:$0xff] %v857_v49  ;;  %860 = vst [vmem:[%s1376_s12 + $0x50] sm:$0xff] %v859_v52  ;;  %v861_v24 = vld [vmem:[%s1380_s17 + $0x60] sm:$0xff]  ;;  %v863_v22 = vld [vmem:[%s1380_s17 + $0x70] sm:$0xff]  ;;  %s2203_s11 = smov (%p914_p11, %s913_s11), 0 }
 0x217   : >> { %v865_v28 = vld [vmem:[%s1380_s17 + $0x80] sm:$0xff]  ;;  %862 = vst [vmem:[%s1376_s12 + $0x60] sm:$0xff] %v861_v24  ;;  %864 = vst [vmem:[%s1376_s12 + $0x70] sm:$0xff] %v863_v22  ;;  %v867_v16 = vld [vmem:[%s1380_s17 + $0x90] sm:$0xff]  ;;  %s1053_s14 = sshll.u32 %s2203_s11, 8  ;;  %s2196_s4 = smov %s2203_s11 }
 0x218   : >> { %866 = vst [vmem:[%s1376_s12 + $0x80] sm:$0xff] %v865_v28  ;;  %v869_v8 = vld [vmem:[%s1380_s17 + $0xa0] sm:$0xff]  ;;  %v871_v18 = vld [vmem:[%s1380_s17 + $0xb0] sm:$0xff]  ;;  %868 = vst [vmem:[%s1376_s12 + $0x90] sm:$0xff] %v867_v16  ;;  %s2125_s15 = scalar_lea.vmem %s1965_s24, %s1053_s14 [#allocation2]   ;;  %s919_s19 = scalar_lea.vmem %s2052_s5, %s1053_s14  }
 0x219   : >> { %870 = vst [vmem:[%s1376_s12 + $0xa0] sm:$0xff] %v869_v8  ;;  %872 = vst [vmem:[%s1376_s12 + $0xb0] sm:$0xff] %v871_v18  ;;  %v873_v31 = vld [vmem:[%s1380_s17 + $0xc0] sm:$0xff]  ;;  %v875_v33 = vld [vmem:[%s1380_s17 + $0xd0] sm:$0xff] }
 0x21a   : >> { %v877_v37 = vld [vmem:[%s1380_s17 + $0xe0] sm:$0xff]  ;;  %874 = vst [vmem:[%s1376_s12 + $0xc0] sm:$0xff] %v873_v31  ;;  %876 = vst [vmem:[%s1376_s12 + $0xd0] sm:$0xff] %v875_v33  ;;  %v879_v23 = vld [vmem:[%s1380_s17 + $0xf0] sm:$0xff] }
 0x21b   : >> { %878 = vst [vmem:[%s1376_s12 + $0xe0] sm:$0xff] %v877_v37  ;;  %v883_v32 = vld [vmem:[%s1380_s17 + $0x18] sm:$0xff]  ;;  %880 = vst [vmem:[%s1376_s12 + $0xf0] sm:$0xff] %v879_v23  ;;  %v885_v41 = vld [vmem:[%s1380_s17 + $0x28] sm:$0xff] }
 0x21c   : >> { %882 = vst [vmem:[%s1376_s12 + $0x8] sm:$0xff] %v881_v26  ;;  %884 = vst [vmem:[%s1376_s12 + $0x18] sm:$0xff] %v883_v32  ;;  %v887_v34 = vld [vmem:[%s1380_s17 + $0x38] sm:$0xff]  ;;  %v889_v36 = vld [vmem:[%s1380_s17 + $0x48] sm:$0xff] }
 0x21d   : >> { %886 = vst [vmem:[%s1376_s12 + $0x28] sm:$0xff] %v885_v41  ;;  %888 = vst [vmem:[%s1376_s12 + $0x38] sm:$0xff] %v887_v34  ;;  %v891_v21 = vld [vmem:[%s1380_s17 + $0x58] sm:$0xff]  ;;  %v893_v45 = vld [vmem:[%s1380_s17 + $0x68] sm:$0xff]  ;;  %845 = sbr.rel (!%p842_p12) target bundleno = 531 (0x213), region = 90 }
 0x21e   : >> { %890 = vst [vmem:[%s1376_s12 + $0x48] sm:$0xff] %v889_v36  ;;  %v895_v43 = vld [vmem:[%s1380_s17 + $0x78] sm:$0xff]  ;;  %892 = vst [vmem:[%s1376_s12 + $0x58] sm:$0xff] %v891_v21  ;;  %v897_v46 = vld [vmem:[%s1380_s17 + $0x88] sm:$0xff] }
 0x21f   : >> { %894 = vst [vmem:[%s1376_s12 + $0x68] sm:$0xff] %v893_v45  ;;  %896 = vst [vmem:[%s1376_s12 + $0x78] sm:$0xff] %v895_v43  ;;  %v899_v47 = vld [vmem:[%s1380_s17 + $0x98] sm:$0xff]  ;;  %v901_v50 = vld [vmem:[%s1380_s17 + $0xa8] sm:$0xff] }
 0x220   : >> { %898 = vst [vmem:[%s1376_s12 + $0x88] sm:$0xff] %v897_v46  ;;  %900 = vst [vmem:[%s1376_s12 + $0x98] sm:$0xff] %v899_v47  ;;  %v903_v54 = vld [vmem:[%s1380_s17 + $0xb8] sm:$0xff]  ;;  %v905_v56 = vld [vmem:[%s1380_s17 + $0xc8] sm:$0xff] }
 0x221   : >> { %902 = vst [vmem:[%s1376_s12 + $0xa8] sm:$0xff] %v901_v50  ;;  %v907_v42 = vld [vmem:[%s1380_s17 + $0xd8] sm:$0xff]  ;;  %904 = vst [vmem:[%s1376_s12 + $0xb8] sm:$0xff] %v903_v54  ;;  %v909_v55 = vld [vmem:[%s1380_s17 + $0xe8] sm:$0xff] }
 0x222   : >> { %906 = vst [vmem:[%s1376_s12 + $0xc8] sm:$0xff] %v905_v56  ;;  %908 = vst [vmem:[%s1376_s12 + $0xd8] sm:$0xff] %v907_v42  ;;  %v911_v63 = vld [vmem:[%s1380_s17 + $0xf8] sm:$0xff]  ;;  %s2195_s17 = smov %s2125_s15 }
 0x223   : >> { %910 = vst [vmem:[%s1376_s12 + $0xe8] sm:$0xff] %v909_v55  ;;  %912 = vst [vmem:[%s1376_s12 + $0xf8] sm:$0xff] %v911_v63  ;;  %s2194_s12 = smov %s919_s19 }
 0x224 PF: > { %s2166_s21 = sand.u32 15, %s2201_s9   ;;  %s1066_s22 = sshll.u32 %s2058_s7, 8 }
 0x225   : > { %s2170_s23 = scalar_lea.vmem %s1965_s24, %s1066_s22 [#allocation2]   ;;  %s926_s25 = scalar_lea.vmem %s2052_s5, %s1066_s22  }
 0x226   : > { %p1058_p13 = scmp.le.s32.totalorder %s2166_s21, 0 }
 0x227   : > { %s1390_s26 = smov (!%p1058_p13), %s926_s25   ;;  %s1394_s20 = smov (!%p1058_p13), %s2170_s23  }
 0x228   : > { %1007 = sbr.rel (%p1058_p13) target bundleno = 569 (0x239), region = 95  ;;  %s1398_s27 = smov (!%p1058_p13), 0  }
 0x229   : > { %s1402_s18 = smov (!%p1058_p13), 0  }
 0x22f LB: >> { %v936_v1 = vld [vmem:[%s1396_s20] sm:$0xff]  ;;  %v938_v35 = vld [vmem:[%s1396_s20 + $0x8] sm:$0xff]  ;;  %s940_s28 = sadd.s32 1, %s1400_s27  ;;  %s930_s18 = sadd.s32 1, %s1404_s18   ;;  %s1404_s18 = sphi %s1402_s18, %s930_s18   ;;  %s1400_s27 = sphi %s1398_s27, %s1399_s27   ;;  %s1396_s20 = sphi %s1394_s20, %s945_s20   ;;  %s1392_s26 = sphi %s1390_s26, %s946_s26  }
 0x230   : >> { %937 = vst [vmem:[%s1392_s26] sm:$0xff] %v936_v1  ;;  %939 = vst [vmem:[%s1392_s26 + $0x8] sm:$0xff] %v938_v35  ;;  %p941_p0 = scmp.ge.s32.totalorder %s940_s28, %s2166_s21  ;;  %p929_p1 = scmp.ge.s32.totalorder %s930_s18, %s2166_s21 }
 0x232   : >> { %s2205_s28 = smov (%p941_p0, %s940_s28), 0  ;;  %932 = sbr.rel (!%p929_p1) target bundleno = 559 (0x22f), region = 101 }
 0x233   : >> { %s1059_s24 = sshll.u32 %s2205_s28, 4  ;;  %s1399_s27 = smov %s2205_s28  }
 0x234   : >> { %s945_s20 = scalar_lea.vmem %s2170_s23, %s1059_s24 [#allocation2]   ;;  %s946_s26 = scalar_lea.vmem %s926_s25, %s1059_s24  }
 0x239 PF: > { %p9_p2 = scmp.ge.s32.totalorder %s1437_s13, 4   ;;  %s2197_s9 = smov %s1368_s10 }
 0x23a   : > { %s2198_s10 = smov %s1445_s16  ;;  %s2199_s11 = smov %s1437_s13 }
 0x23b   :  { %11 = sbr.rel (!%p9_p2) target bundleno = 2 (0x2), region = 112 }

</bundles_post_ra>
